<compile_context>
chip_gen: v5e
topology: v5e:2x2
jax: 0.10.0
libtpu: 0.0.40
codegen_flags: <defaults>
</compile_context>

<pallas_src>
import math

import jax
import jax.numpy as jnp
from jax.experimental import pallas as pl
from jax.experimental.pallas import tpu as pltpu


def _round_up(x, n):
    return ((x + n - 1) // n) * n


# ----------------------------------------------------------------------------
# Pallas kernel: fused  slice -> fc1 -> relu -> fc2 -> relu -> pack(enc, extra)
# ----------------------------------------------------------------------------
def _asset_encoder_kernel(state_ref, w1_ref, b1_ref, w2_ref, b2_ref, o_ref):
    asset_cols = w1_ref.shape[0]        # A * features_per_asset   (static)
    enc_cols = w2_ref.shape[1]          # A * output_size          (static)
    tile_m, total = state_ref.shape
    extra_cols = total - asset_cols
    pad_cols = o_ref.shape[1] - enc_cols - extra_cols

    s = state_ref[...]                                   # (tile_m, total)  f32
    x = s[:, :asset_cols]                                # (tile_m, A*F)

    h = jnp.dot(x, w1_ref[...], preferred_element_type=jnp.float32)
    h = jnp.maximum(h + b1_ref[...], 0.0)                # ReLU(fc1)
    y = jnp.dot(h, w2_ref[...], preferred_element_type=jnp.float32)
    enc = jnp.maximum(y + b2_ref[...], 0.0)              # ReLU(fc2), (tile_m, A*out)

    # Direct slice-stores (no lane-axis concatenate / cross-lane relayout).
    o_ref[:, :enc_cols] = enc
    if extra_cols > 0:
        o_ref[:, enc_cols:enc_cols + extra_cols] = s[:, asset_cols:]
    if pad_cols > 0:
        # Keep the lane padding deterministic (cheap; avoids writing stale VMEM
        # back to the padded HBM columns).
        o_ref[:, enc_cols + extra_cols:] = jnp.zeros((tile_m, pad_cols), o_ref.dtype)


# ----------------------------------------------------------------------------
# Tiling / specs
# ----------------------------------------------------------------------------
def _choose_tile_m(m, total_cols, out_cols, weight_bytes):
    """Balanced, VMEM-derived row tile (multiple of 8 sublanes, >= 2 blocks)."""
    try:
        vmem_cap = pltpu.get_tpu_info().vmem_capacity_bytes
    except Exception:                       # older jax / no hw info at trace time
        vmem_cap = 64 << 20                 # v7x has the smallest VMEM (64 MiB)
    # Stay well inside every generation's scoped-VMEM default (v5e 16 MiB,
    # v6e/v7x 32 MiB): budget double-buffered state+output blocks plus the
    # single-buffered weight slabs.
    budget = max(min(12 << 20, vmem_cap // 4) - weight_bytes, 1 << 20)
    row_bytes = 2 * 4 * (total_cols + out_cols)          # 2x-buffered f32 blocks
    max_rows = max(8, (budget // row_bytes) // 8 * 8)

    # >= 2 balanced blocks: overlaps HBM<->VMEM DMA with compute and shards the
    # grid across both v7x TensorCores; ~1024-row tiles already sit near the
    # HBM roofline, so there is no upside to 2048-row blocks.
    n_blk = max(2, pl.cdiv(m, 1024))
    tile_m = min(_round_up(pl.cdiv(m, n_blk), 8), max_rows)
    if tile_m >= m:                          # tiny batch: one full-extent block
        tile_m = m
    return tile_m


def _resident_spec(shape):
    # Weight/bias slabs: constant index_map -> DMA'd once; single-buffer them so
    # the (A^2-sized) block-diagonal slabs don't take 2x VMEM.
    kwargs = {}
    if hasattr(pl, "Buffered"):
        kwargs["pipeline_mode"] = pl.Buffered(1)
    try:
        return pl.BlockSpec(shape, lambda i: (0, 0), **kwargs)
    except TypeError:                        # fallback for older BlockSpec signatures
        return pl.BlockSpec(shape, lambda i: (0, 0))


def _asset_encoder_pallas(state, w1_blk, b1_blk, w2_blk, b2_blk, out_padded):
    m, total = state.shape
    asset_cols, hid_cols = w1_blk.shape
    enc_cols = w2_blk.shape[1]

    weight_bytes = 4 * (w1_blk.size + b1_blk.size + w2_blk.size + b2_blk.size)
    tile_m = _choose_tile_m(m, total, out_padded, weight_bytes)
    grid = (pl.cdiv(m, tile_m),)

    cost = pl.CostEstimate(
        flops=2 * m * (asset_cols * hid_cols + hid_cols * enc_cols),
        transcendentals=0,
        bytes_accessed=4 * m * (total + out_padded) + weight_bytes,
    )

    return pl.pallas_call(
        _asset_encoder_kernel,
        out_shape=jax.ShapeDtypeStruct((m, out_padded), jnp.float32),
        grid=grid,
        in_specs=[
            pl.BlockSpec((tile_m, total), lambda i: (i, 0)),   # state rows, pipelined
            _resident_spec(w1_blk.shape),
            _resident_spec(b1_blk.shape),
            _resident_spec(w2_blk.shape),
            _resident_spec(b2_blk.shape),
        ],
        out_specs=pl.BlockSpec((tile_m, out_padded), lambda i: (i, 0)),
        compiler_params=pltpu.CompilerParams(
            dimension_semantics=("parallel",)),                # megacore on v7x
        cost_estimate=cost,
    )(state, w1_blk, b1_blk, w2_blk, b2_blk)


# ----------------------------------------------------------------------------
# Parameters (mirroring PyTorch reset_parameters) + hoisted block-diag prep
# ----------------------------------------------------------------------------
def init_asset_encoder_params(key, features_per_asset, encoding_size=16,
                              output_size=None):
    output_size = output_size or encoding_size
    k1, k2 = jax.random.split(key)
    lim1 = 1.0 / math.sqrt(features_per_asset)
    lim2 = 1.0 / math.sqrt(32.0)
    # stored as (in, out) so the kernel computes x @ W
    w1 = jax.random.uniform(k1, (features_per_asset, 32), jnp.float32,
                            minval=-lim1, maxval=lim1)
    b1 = jnp.zeros((32,), jnp.float32)
    w2 = jax.random.uniform(k2, (32, output_size), jnp.float32,
                            minval=-lim2, maxval=lim2)
    b2 = jnp.zeros((output_size,), jnp.float32)
    return dict(w1=w1, b1=b1, w2=w2, b2=b2)


def prepare_asset_encoder(params, num_assets):
    """Build the lane-dense block-diagonal slabs ONCE (hoisted out of forward)."""
    w1, b1, w2, b2 = params["w1"], params["b1"], params["w2"], params["b2"]
    hid = w1.shape[1]
    out_size = w2.shape[1]
    eye = jnp.eye(num_assets, dtype=jnp.float32)
    # TODO(synk): for very large num_assets the A^2-sized block-diagonal slabs
    # (and the A-x wasted MXU FLOPs) should be replaced by a per-asset batched
    # matmul formulation.
    return dict(
        w1_blk=jnp.kron(eye, w1),                                       # (A*F,  A*32)
        b1_blk=jnp.tile(b1, num_assets).reshape(1, num_assets * hid),   # (1,    A*32)
        w2_blk=jnp.kron(eye, w2),                                       # (A*32, A*out)
        b2_blk=jnp.tile(b2, num_assets).reshape(1, num_assets * out_size),
    )


# ----------------------------------------------------------------------------
# Forward pass
# ----------------------------------------------------------------------------
@jax.jit
def asset_encoder_forward(prepared, state):
    """
    state: (batch, num_assets*features_per_asset + extra)  f32
    returns (batch, num_assets*output_size + extra)        f32
    """
    w1_blk, b1_blk = prepared["w1_blk"], prepared["b1_blk"]
    w2_blk, b2_blk = prepared["w2_blk"], prepared["b2_blk"]
    asset_cols = w1_blk.shape[0]
    enc_cols = w2_blk.shape[1]
    _, total = state.shape

    # PyTorch "malformed input" branch: zero-pad short states.
    if total < asset_cols:
        state = jnp.pad(state, ((0, 0), (0, asset_cols - total)))
        total = asset_cols
    # TODO(synk): the PyTorch RuntimeError reshape-recovery branch (mutating
    # features_per_asset at runtime) has no static-shape JAX equivalent.

    out_cols = enc_cols + (total - asset_cols)
    out_padded = _round_up(out_cols, 128)        # lane-dense output contract
    out = _asset_encoder_pallas(state, w1_blk, b1_blk, w2_blk, b2_blk, out_padded)
    return out[:, :out_cols] if out_padded != out_cols else out


# ----------------------------------------------------------------------------
# Pure-JAX reference (per-asset formulation, as in the PyTorch module)
# ----------------------------------------------------------------------------
def asset_encoder_reference(params, state, num_assets):
    w1, b1, w2, b2 = params["w1"], params["b1"], params["w2"], params["b2"]
    fpa = w1.shape[0]
    out_size = w2.shape[1]
    batch, total = state.shape
    at = num_assets * fpa
    if total < at:
        state = jnp.pad(state, ((0, 0), (0, at - total)))
        total = at
    af = state[:, :at].reshape(batch, num_assets, fpa)
    extra = state[:, at:]
    h = jax.nn.relu(af @ w1 + b1)
    y = jax.nn.relu(h @ w2 + b2)
    y = y.reshape(batch, num_assets * out_size)
    return jnp.concatenate([y, extra], axis=1) if extra.shape[1] > 0 else y


if __name__ == "__main__":
    key = jax.random.PRNGKey(0)
    k_param, k_state, k_state2 = jax.random.split(key, 3)

    num_assets = 4
    features_per_asset = 8
    encoding_size = 16
    extra = 3
    total_cols = features_per_asset * num_assets + extra   # 35
    out_cols = num_assets * encoding_size + extra           # 67

    params = init_asset_encoder_params(k_param, features_per_asset,
                                       encoding_size=encoding_size)
    prepared = prepare_asset_encoder(params, num_assets)    # kron hoisted here

    # Small batch: single full-extent block.
    state = jax.random.normal(k_state, (2, total_cols), jnp.float32)
    out = jax.block_until_ready(asset_encoder_forward(prepared, state))
    assert out.shape == (2, out_cols), out.shape
    ref = asset_encoder_reference(params, state, num_assets)
    assert jnp.allclose(out, ref, atol=2e-2, rtol=2e-2), \
        f"max err {jnp.max(jnp.abs(out - ref))}"

    # Multi-block grid with a partial final block (tile_m=16 over 20 rows):
    # exercises the masked boundary read/writeback path from the review.
    state2 = jax.random.normal(k_state2, (20, total_cols), jnp.float32)
    out2 = jax.block_until_ready(asset_encoder_forward(prepared, state2))
    ref2 = asset_encoder_reference(params, state2, num_assets)
    assert out2.shape == ref2.shape, (out2.shape, ref2.shape)
    assert jnp.allclose(out2, ref2, atol=2e-2, rtol=2e-2), \
        f"max err {jnp.max(jnp.abs(out2 - ref2))}"

    print("KERNEL_OK")
</pallas_src>

<mosaic_0001>
module attributes {stable_mosaic.version = 11 : i64} {
  func.func @_asset_encoder_kernel(%arg0: i32, %arg1: memref<2x35xf32, #tpu.memory_space<vmem>>, %arg2: memref<32x128xf32, #tpu.memory_space<vmem>>, %arg3: memref<1x128xf32, #tpu.memory_space<vmem>>, %arg4: memref<128x64xf32, #tpu.memory_space<vmem>>, %arg5: memref<1x64xf32, #tpu.memory_space<vmem>>, %arg6: memref<2x128xf32, #tpu.memory_space<vmem>>) attributes {dimension_semantics = [#tpu.dimension_semantics<parallel>], iteration_bounds = array<i64: 1>, scalar_prefetch = 0 : i64, scratch_operands = 0 : i64, tpu.core_type = #tpu.core_type<tc>, window_params = [{transform_indices = @transform_0, window_bounds = array<i64: 2, 35>}, {pipeline_mode = #tpu.pipeline_mode<synchronous>, transform_indices = @transform_1, window_bounds = array<i64: 32, 128>}, {pipeline_mode = #tpu.pipeline_mode<synchronous>, transform_indices = @transform_2, window_bounds = array<i64: 1, 128>}, {pipeline_mode = #tpu.pipeline_mode<synchronous>, transform_indices = @transform_3, window_bounds = array<i64: 128, 64>}, {pipeline_mode = #tpu.pipeline_mode<synchronous>, transform_indices = @transform_4, window_bounds = array<i64: 1, 64>}, {transform_indices = @transform_5, window_bounds = array<i64: 2, 128>}]} {
    %c0 = arith.constant 0 : index
    %c0_0 = arith.constant 0 : index
    %0 = vector.load %arg1[%c0, %c0_0] : memref<2x35xf32, #tpu.memory_space<vmem>>, vector<2x35xf32>
    %1 = vector.extract_strided_slice %0 {offsets = [0, 0], sizes = [2, 32], strides = [1, 1]} : vector<2x35xf32> to vector<2x32xf32>
    %c0_1 = arith.constant 0 : index
    %c0_2 = arith.constant 0 : index
    %2 = vector.load %arg2[%c0_1, %c0_2] : memref<32x128xf32, #tpu.memory_space<vmem>>, vector<32x128xf32>
    %cst = arith.constant dense<0.000000e+00> : vector<2x128xf32>
    %3 = tpu.matmul %1, %2, %cst {dimension_numbers = #tpu.dot_dimension_numbers<[1], [0], [0], [1], [0, 0, 1, 1], [], []>} : vector<2x32xf32>, vector<32x128xf32>, vector<2x128xf32> -> vector<2x128xf32>
    %c0_3 = arith.constant 0 : index
    %c0_4 = arith.constant 0 : index
    %4 = vector.load %arg3[%c0_3, %c0_4] : memref<1x128xf32, #tpu.memory_space<vmem>>, vector<1x128xf32>
    %5 = vector.broadcast %4 : vector<1x128xf32> to vector<2x128xf32>
    %6 = arith.addf %3, %5 : vector<2x128xf32>
    %cst_5 = arith.constant 0.000000e+00 : f32
    %7 = vector.broadcast %cst_5 : f32 to vector<2x128xf32>
    %8 = arith.maximumf %6, %7 : vector<2x128xf32>
    %c0_6 = arith.constant 0 : index
    %c0_7 = arith.constant 0 : index
    %9 = vector.load %arg4[%c0_6, %c0_7] : memref<128x64xf32, #tpu.memory_space<vmem>>, vector<128x64xf32>
    %cst_8 = arith.constant dense<0.000000e+00> : vector<2x64xf32>
    %10 = tpu.matmul %8, %9, %cst_8 {dimension_numbers = #tpu.dot_dimension_numbers<[1], [0], [0], [1], [0, 0, 1, 1], [], []>} : vector<2x128xf32>, vector<128x64xf32>, vector<2x64xf32> -> vector<2x64xf32>
    %c0_9 = arith.constant 0 : index
    %c0_10 = arith.constant 0 : index
    %11 = vector.load %arg5[%c0_9, %c0_10] : memref<1x64xf32, #tpu.memory_space<vmem>>, vector<1x64xf32>
    %12 = vector.broadcast %11 : vector<1x64xf32> to vector<2x64xf32>
    %13 = arith.addf %10, %12 : vector<2x64xf32>
    %cst_11 = arith.constant 0.000000e+00 : f32
    %14 = vector.broadcast %cst_11 : f32 to vector<2x64xf32>
    %15 = arith.maximumf %13, %14 : vector<2x64xf32>
    %c0_12 = arith.constant 0 : index
    %c0_13 = arith.constant 0 : index
    %16 = vector.load %arg6[%c0_12, %c0_13] : memref<2x128xf32, #tpu.memory_space<vmem>>, vector<2x64xf32>
    tpu.vector_store %arg6[%c0_12, %c0_13], %15 {strides = array<i32>} : memref<2x128xf32, #tpu.memory_space<vmem>>, vector<2x64xf32>,
    %17 = vector.extract_strided_slice %0 {offsets = [0, 32], sizes = [2, 3], strides = [1, 1]} : vector<2x35xf32> to vector<2x3xf32>
    %c0_14 = arith.constant 0 : index
    %c64 = arith.constant 64 : index
    %18 = vector.load %arg6[%c0_14, %c64] : memref<2x128xf32, #tpu.memory_space<vmem>>, vector<2x3xf32>
    tpu.vector_store %arg6[%c0_14, %c64], %17 {strides = array<i32>} : memref<2x128xf32, #tpu.memory_space<vmem>>, vector<2x3xf32>,
    %cst_15 = arith.constant 0.000000e+00 : f32
    %19 = vector.broadcast %cst_15 : f32 to vector<2x61xf32>
    %c0_16 = arith.constant 0 : index
    %c67 = arith.constant 67 : index
    %20 = vector.load %arg6[%c0_16, %c67] : memref<2x128xf32, #tpu.memory_space<vmem>>, vector<2x61xf32>
    tpu.vector_store %arg6[%c0_16, %c67], %19 {strides = array<i32>} : memref<2x128xf32, #tpu.memory_space<vmem>>, vector<2x61xf32>,
    return
  }
  func.func @transform_0(%arg0: i32) -> (i32, i32) {
    %c0_i32 = arith.constant 0 : i32
    %c0_i32_0 = arith.constant 0 : i32
    return %arg0, %c0_i32 : i32, i32
  }
  func.func @transform_1(%arg0: i32) -> (i32, i32) {
    %c0_i32 = arith.constant 0 : i32
    %c0_i32_0 = arith.constant 0 : i32
    %c0_i32_1 = arith.constant 0 : i32
    return %c0_i32, %c0_i32_0 : i32, i32
  }
  func.func @transform_2(%arg0: i32) -> (i32, i32) {
    %c0_i32 = arith.constant 0 : i32
    %c0_i32_0 = arith.constant 0 : i32
    %c0_i32_1 = arith.constant 0 : i32
    return %c0_i32, %c0_i32_0 : i32, i32
  }
  func.func @transform_3(%arg0: i32) -> (i32, i32) {
    %c0_i32 = arith.constant 0 : i32
    %c0_i32_0 = arith.constant 0 : i32
    %c0_i32_1 = arith.constant 0 : i32
    return %c0_i32, %c0_i32_0 : i32, i32
  }
  func.func @transform_4(%arg0: i32) -> (i32, i32) {
    %c0_i32 = arith.constant 0 : i32
    %c0_i32_0 = arith.constant 0 : i32
    %c0_i32_1 = arith.constant 0 : i32
    return %c0_i32, %c0_i32_0 : i32, i32
  }
  func.func @transform_5(%arg0: i32) -> (i32, i32) {
    %c0_i32 = arith.constant 0 : i32
    %c0_i32_0 = arith.constant 0 : i32
    return %arg0, %c0_i32 : i32, i32
  }
}

</mosaic_0001>

<bundles_post_ra>
// kernel: asset_encoder_forward.1
= control target key start
LH: loop header
LB: loop body
LE: loop exit
PB: predicated region body
PF: predicated region fallthrough
CT: control target
= control target key end

     0   :  { %vm30_vm0 = vcmask 261120   ;;  %s258_s0 = inlined_call_operand.vmem [shape: f32[2,35], index: 0, kind: input, shape index: {}]   ;;  %s259_s1 = inlined_call_operand.vmem [shape: f32[32,128], index: 1, kind: input, shape index: {}]   ;;  %s260_s2 = inlined_call_operand.vmem [shape: f32[1,128], index: 2, kind: input, shape index: {}]   ;;  %s261_s3 = inlined_call_operand.vmem [shape: f32[128,64], index: 3, kind: input, shape index: {}]   ;;  %s262_s4 = inlined_call_operand.vmem [shape: f32[1,64], index: 4, kind: input, shape index: {}]   ;;  %s263_s5 = inlined_call_operand.hbm [shape: f32[2,128], index: 5, kind: output, shape index: {}]  }
   0x1   :  { %v25_v0 = vld [vmem:[%s259_s1 + $0x18] sm:$0xff]  ;;  %v24_v1 = vld [vmem:[%s259_s1 + $0x10] sm:$0xff]  ;;  %v23_v3 = vld [vmem:[%s259_s1 + $0x8] sm:$0xff] }
   0x2   :  { %46 = vmatpush.msra.mxu0 %v25_v0  ;;  %v70_v2 = vld [vmem:[%s261_s3 + $0x78] sm:$0xff]  ;;  %v69_v4 = vld [vmem:[%s261_s3 + $0x70] sm:$0xff]  ;;  %v68_v5 = vld [vmem:[%s261_s3 + $0x68] sm:$0xff] }
   0x3   :  { %75 = vmatpush.msra.mxu1 %v70_v2  ;;  %v22_v6 = vld [vmem:[%s259_s1] sm:$0xff]  ;;  %v66_v9 = vld [vmem:[%s261_s3 + $0x58] sm:$0xff] }
   0x4   :  { %47 = vmatpush.msra.mxu0 %v24_v1  ;;  %v21_v7 = vld [vmem:[%s258_s0] sm:$0x3] }
   0x5   :  { %76 = vmatpush.msra.mxu1 %v69_v4  ;;  %v67_v8 = vld [vmem:[%s261_s3 + $0x60] sm:$0xff] }
   0x6   :  { %48 = vmatpush.msra.mxu0 %v23_v3 }
   0x7   :  { %77 = vmatpush.msra.mxu1 %v68_v5 }
   0x8   :  { %49 = vmatpush.msra.mxu0 %v22_v6 }
   0x9   :  { %10 = vsyncpa [#allocation3], 0  ;;  %121 = vmatmul.msk.f32.vlgmr.msra.gmra.mxu0 %vm30_vm0, %v21_v7  ;;  %78 = vmatpush.msra.mxu1 %v67_v8  ;;  %v65_v10 = vld [vmem:[%s261_s3 + $0x50] sm:$0xff]  ;;  %v64_v11 = vld [vmem:[%s261_s3 + $0x48] sm:$0xff]  ;;  %s153_s15 = smov 32   ;;  %vm96_vm1 = vcmask 517120  }
   0xa   :  { %98 = vrot.lane.b32.xlu0 %v21_v7, %s153_s15  ;;  %v63_v12 = vld [vmem:[%s261_s3 + $0x40] sm:$0xff]  ;;  %v62_v13 = vld [vmem:[%s261_s3 + $0x38] sm:$0xff]  ;;  %v61_v14 = vld [vmem:[%s261_s3 + $0x30] sm:$0xff]  ;;  %s154_s1 = smov [#allocation2]   ;;  %s112_s14 = sshll.u32 %s263_s5, 4  ;;  %vm101_vm2 = vcmask 542208   ;;  %s113_s14 = int_to_ptr.hbm [resolvable:$true] %s112_s14 }
   0xb   :  { %79 = vmatpush.msra.mxu1 %v66_v9  ;;  %v60_v15 = vld [vmem:[%s261_s3 + $0x28] sm:$0xff]  ;;  %v59_v16 = vld [vmem:[%s261_s3 + $0x20] sm:$0xff]  ;;  %v58_v17 = vld [vmem:[%s261_s3 + $0x18] sm:$0xff]  ;;  %s110_s13 = sshll.u32 %s154_s1, 4  ;;  %vm103_vm3 = vcmask 1041944   ;;  %v155_v30 = vmov 0.0   ;;  %s111_s13 = int_to_ptr.vmem [resolvable:$true] %s110_s13 }
   0xc   :  { %v57_v18 = vld [vmem:[%s261_s3 + $0x10] sm:$0xff]  ;;  %v56_v19 = vld [vmem:[%s261_s3 + $0x8] sm:$0xff]  ;;  %v55_v20 = vld [vmem:[%s261_s3] sm:$0xff] }
   0xd   :  { %80 = vmatpush.msra.mxu1 %v65_v10  ;;  %v125_v21 = vld [vmem:[%s260_s2] ss:$0 sm:$0xff] }
   0xe   :  { %v126_v25 = vld [vmem:[%s262_s4] ss:$0 sm:$0xff] }
   0xf   :  { %81 = vmatpush.msra.mxu1 %v64_v11 }
  0x11   :  { %82 = vmatpush.msra.mxu1 %v63_v12 }
  0x13   :  { %83 = vmatpush.msra.mxu1 %v62_v13 }
  0x15   :  { %84 = vmatpush.msra.mxu1 %v61_v14 }
  0x17   :  { %85 = vmatpush.msra.mxu1 %v60_v15 }
  0x19   :  { %86 = vmatpush.msra.mxu1 %v59_v16 }
  0x1b   :  { %87 = vmatpush.msra.mxu1 %v58_v17 }
  0x1d   :  { %88 = vmatpush.msra.mxu1 %v57_v18 }
  0x1f   :  { %89 = vmatpush.msra.mxu1 %v56_v19 }
  0x21   :  { %90 = vmatpush.msra.mxu1 %v55_v20 }
  0x7c   :  { %v99_v29 = vpop.permute.xlu0 %98 }
  0x86   :  { %v51_v22 = vpop.f32.mrf.mxu0 }
  0x87   :  { %v52_v23 = vadd.f32 %v125_v21, %v51_v22 }
  0x89   :  { %v54_v24 = vmax.f32 %v52_v23, 0.0 }
  0x8b   :  { %91 = vmatmul.f32.vlgmr.msra.gmra.mxu1 %v54_v24 }
 0x108   :  { %v92_v26 = vpop.f32.mrf.mxu1 }
 0x109   :  { %v93_v27 = vadd.f32 %v126_v25, %v92_v26 }
 0x10b   :  { %v95_v28 = vmax.f32 %v93_v27, 0.0 }
 0x10d   :  { %97 = vst.msk [vmem:[#allocation2] sm:$0x3] %vm96_vm1, %v95_v28 }
 0x10e   :  { %102 = vst.msk [vmem:[#allocation2] sm:$0x3] %vm101_vm2, %v99_v29 }
 0x10f   :  { %104 = vst.msk [vmem:[#allocation2] sm:$0x3] %vm103_vm3, %v155_v30 }
 0x110   :  { %115 = dma.vmem_to_hbm [thread:$0]  %s111_s13, 32, %s113_s14, [#allocation3]  }
 0x111   :  { %151 = dma.done.wait [#allocation3], 32  }
 0x112   :  { %152 = vsyncadd [#allocation3], 4294967264 }
 0x113   :  { %120 = vsyncpa [#allocation3], 1 }

</bundles_post_ra>
